<compile_context>
chip_gen: v5e
topology: v5e:2x2
jax: 0.10.0
libtpu: 0.0.40
codegen_flags: <defaults>
</compile_context>

<pallas_src>
import functools

import jax
import jax.numpy as jnp
from jax.experimental import pallas as pl
from jax.experimental.pallas import tpu as pltpu


def _round_up(x, m):
    return ((x + m - 1) // m) * m


def _resblock_kernel(x_ref, w1_ref, b1_ref, w2_ref, b2_ref, o_ref, pad_ref,
                     *, H, W, P, T, res_scale):
    """Fused ResBlock for one image.

    x_ref  : (1, C, H*W)        input image (channels on sublanes, pixels on lanes)
    w*_ref : (C, 9*C)           conv weights, (Cout, kh*kw*Cin) im2col layout
    b*_ref : (C, 1)             conv bias
    o_ref  : (1, C, H*W)        output image (NCHW-native, lane dense)
    pad_ref: (C, P + H*W + T)   f32 flat line buffer; interior starts at lane
                                offset P (128-aligned); pads hold zeros so
                                row-boundary taps read zeros.
    """
    HW = H * W
    C = x_ref.shape[1]

    x = x_ref[0].astype(jnp.float32)                       # (C, HW)

    # Zero only the halo/pad regions (aligned full-lane stores). The interior
    # is overwritten before any tap reads it, so it never needs clearing.
    pad_ref[:, 0:P] = jnp.zeros((C, P), jnp.float32)
    pad_ref[:, P + HW:P + HW + T] = jnp.zeros((C, T), jnp.float32)

    # Column masks kill the W-direction wrap-around taps; row boundaries are
    # handled by the zero pad regions of the flat line buffer.
    col = jax.lax.broadcasted_iota(jnp.int32, (C, HW), 1) % W
    mask_l = col >= 1                 # taps reading (h+dh, w-1)
    mask_r = col <= W - 2             # taps reading (h+dh, w+1)

    base = P - (W + 1)                # lane offset of tap (kh=0, kw=0)

    def im2col():
        """(9*C, HW) slab: the 9 shifted+masked taps of pad_ref's interior."""
        taps = []
        for kh in range(3):
            for kw in range(3):
                start = base + kh * W + kw          # static lane offset
                t = pad_ref[:, start:start + HW]    # (C, HW)
                if kw == 0:
                    t = jnp.where(mask_l, t, 0.0)
                elif kw == 2:
                    t = jnp.where(mask_r, t, 0.0)
                taps.append(t)
        return jnp.concatenate(taps, axis=0)        # sublane-aligned concat

    def conv3x3(w_ref_, b_ref_):
        # Single MXU contraction over K = 9*Cin; output (C, HW) is lane dense.
        return jnp.dot(w_ref_[...].astype(jnp.float32), im2col(),
                       preferred_element_type=jnp.float32) + b_ref_[...]

    # conv1 + bias + ReLU (intermediate stays in VMEM / vregs).
    pad_ref[:, P:P + HW] = x                         # 128-aligned store
    h1 = jnp.maximum(conv3x3(w1_ref, b1_ref), 0.0)

    # conv2 + bias, * res_scale, + residual add (fused epilogue).
    pad_ref[:, P:P + HW] = h1                        # 128-aligned store
    out = conv3x3(w2_ref, b2_ref) * res_scale + x
    o_ref[0] = out.astype(o_ref.dtype)


@functools.partial(jax.jit, static_argnames=("res_scale",))
def resblock_forward(x_nchw, params, res_scale=1.0):
    """ResBlock forward. PyTorch layouts: x (N,C,H,W), w (Cout,Cin,3,3), b (C,)."""
    w1, b1, w2, b2 = params
    N, C, H, W = x_nchw.shape
    HW = H * W
    P = _round_up(W + 1, 128)     # 128-aligned interior start (>= max tap halo)
    T = _round_up(W + 1, 128)     # trailing halo, 128-aligned

    # Free layout plumbing (trailing-dim collapse); weights go to (Cout, 9*Cin)
    # with index order (kh, kw, cin) matching the in-kernel im2col slab.
    x_flat = x_nchw.reshape(N, C, HW)
    w1f = jnp.transpose(w1, (0, 2, 3, 1)).reshape(C, 9 * C)
    w2f = jnp.transpose(w2, (0, 2, 3, 1)).reshape(C, 9 * C)
    b1c = b1.reshape(C, 1)
    b2c = b2.reshape(C, 1)

    kernel = functools.partial(_resblock_kernel, H=H, W=W, P=P, T=T,
                               res_scale=float(res_scale))
    # TODO(synk): for production sizes (n_feats>=64, H,W>=128) add H-tiling with a
    # 1-row halo (v7x VMEM = 64 MiB) and a bf16 MXU fast path (f32 epilogue).
    out_flat = pl.pallas_call(
        kernel,
        out_shape=jax.ShapeDtypeStruct((N, C, HW), x_nchw.dtype),
        grid=(N,),
        in_specs=[
            pl.BlockSpec((1, C, HW), lambda n: (n, 0, 0)),
            pl.BlockSpec((C, 9 * C), lambda n: (0, 0)),
            pl.BlockSpec((C, 1), lambda n: (0, 0)),
            pl.BlockSpec((C, 9 * C), lambda n: (0, 0)),
            pl.BlockSpec((C, 1), lambda n: (0, 0)),
        ],
        out_specs=pl.BlockSpec((1, C, HW), lambda n: (n, 0, 0)),
        scratch_shapes=[pltpu.VMEM((C, P + HW + T), jnp.float32)],
        compiler_params=pltpu.CompilerParams(
            dimension_semantics=("parallel",)),
    )(x_flat, w1f, b1c, w2f, b2c)
    return out_flat.reshape(N, C, H, W)


if __name__ == "__main__":
    N, C, H, W = 2, 8, 16, 16
    K = 3
    RES_SCALE = 1.0

    key = jax.random.PRNGKey(0)
    kx, k1, kb1, k2, kb2 = jax.random.split(key, 5)
    x = jax.random.normal(kx, (N, C, H, W), jnp.float32)

    # PyTorch-style init: U(-1/sqrt(fan_in), 1/sqrt(fan_in)); OIHW weights, (C,) biases.
    fan_in = C * K * K
    bound = float(1.0 / (fan_in ** 0.5))
    w1 = jax.random.uniform(k1, (C, C, K, K), jnp.float32, -bound, bound)
    b1 = jax.random.uniform(kb1, (C,), jnp.float32, -bound, bound)
    w2 = jax.random.uniform(k2, (C, C, K, K), jnp.float32, -bound, bound)
    b2 = jax.random.uniform(kb2, (C,), jnp.float32, -bound, bound)

    out = resblock_forward(x, (w1, b1, w2, b2), res_scale=RES_SCALE)
    out = jax.block_until_ready(out)

    # Pure-JAX reference (XLA convs, PyTorch NCHW/OIHW semantics).
    dn = ("NCHW", "OIHW", "NCHW")
    r = jax.lax.conv_general_dilated(x, w1, (1, 1), "SAME", dimension_numbers=dn,
                                     precision=jax.lax.Precision.HIGHEST)
    r = jnp.maximum(r + b1[None, :, None, None], 0.0)
    r = jax.lax.conv_general_dilated(r, w2, (1, 1), "SAME", dimension_numbers=dn,
                                     precision=jax.lax.Precision.HIGHEST)
    ref = (r + b2[None, :, None, None]) * RES_SCALE + x

    assert out.shape == x.shape and out.dtype == x.dtype
    assert jnp.allclose(out, ref, atol=1e-4, rtol=1e-4), "mismatch vs reference"
    print("KERNEL_OK")
</pallas_src>

<mosaic_0001>
module attributes {stable_mosaic.version = 11 : i64} {
  func.func @_resblock_kernel(%arg0: i32, %arg1: memref<1x8x256xf32, #tpu.memory_space<vmem>>, %arg2: memref<8x72xf32, #tpu.memory_space<vmem>>, %arg3: memref<8x1xf32, #tpu.memory_space<vmem>>, %arg4: memref<8x72xf32, #tpu.memory_space<vmem>>, %arg5: memref<8x1xf32, #tpu.memory_space<vmem>>, %arg6: memref<1x8x256xf32, #tpu.memory_space<vmem>>, %arg7: memref<8x512xf32, #tpu.memory_space<vmem>>) attributes {dimension_semantics = [#tpu.dimension_semantics<parallel>], iteration_bounds = array<i64: 2>, scalar_prefetch = 0 : i64, scratch_operands = 1 : i64, tpu.core_type = #tpu.core_type<tc>, window_params = [{transform_indices = @transform_0, window_bounds = array<i64: 1, 8, 256>}, {pipeline_mode = #tpu.pipeline_mode<synchronous>, transform_indices = @transform_1, window_bounds = array<i64: 8, 72>}, {pipeline_mode = #tpu.pipeline_mode<synchronous>, transform_indices = @transform_2, window_bounds = array<i64: 8, 1>}, {pipeline_mode = #tpu.pipeline_mode<synchronous>, transform_indices = @transform_3, window_bounds = array<i64: 8, 72>}, {pipeline_mode = #tpu.pipeline_mode<synchronous>, transform_indices = @transform_4, window_bounds = array<i64: 8, 1>}, {transform_indices = @transform_5, window_bounds = array<i64: 1, 8, 256>}]} {
    %c0 = arith.constant 0 : index
    %c0_0 = arith.constant 0 : index
    %c0_1 = arith.constant 0 : index
    %0 = vector.load %arg1[%c0, %c0_0, %c0_1] : memref<1x8x256xf32, #tpu.memory_space<vmem>>, vector<1x8x256xf32>
    %1 = vector.shape_cast %0 : vector<1x8x256xf32> to vector<8x256xf32>
    %cst = arith.constant 0.000000e+00 : f32
    %2 = vector.broadcast %cst : f32 to vector<8x128xf32>
    %c0_2 = arith.constant 0 : index
    %c0_3 = arith.constant 0 : index
    %3 = vector.load %arg7[%c0_2, %c0_3] : memref<8x512xf32, #tpu.memory_space<vmem>>, vector<8x128xf32>
    tpu.vector_store %arg7[%c0_2, %c0_3], %2 {strides = array<i32>} : memref<8x512xf32, #tpu.memory_space<vmem>>, vector<8x128xf32>,
    %cst_4 = arith.constant 0.000000e+00 : f32
    %4 = vector.broadcast %cst_4 : f32 to vector<8x128xf32>
    %c0_5 = arith.constant 0 : index
    %c384 = arith.constant 384 : index
    %5 = vector.load %arg7[%c0_5, %c384] : memref<8x512xf32, #tpu.memory_space<vmem>>, vector<8x128xf32>
    tpu.vector_store %arg7[%c0_5, %c384], %4 {strides = array<i32>} : memref<8x512xf32, #tpu.memory_space<vmem>>, vector<8x128xf32>,
    %6 = tpu.iota {dimensions = array<i32: 1>} : vector<8x256xi32>
    %c16_i32 = arith.constant 16 : i32
    %c0_i32 = arith.constant 0 : i32
    %7 = arith.cmpi eq, %c16_i32, %c0_i32 : i32
    %c1_i32 = arith.constant 1 : i32
    %8 = arith.select %7, %c1_i32, %c16_i32 : i32
    %9 = vector.broadcast %8 : i32 to vector<8x256xi32>
    %10 = arith.remsi %6, %9 : vector<8x256xi32>
    %c0_i32_6 = arith.constant 0 : i32
    %11 = vector.broadcast %c0_i32_6 : i32 to vector<8x256xi32>
    %12 = arith.cmpi ne, %10, %11 : vector<8x256xi32>
    %c0_i32_7 = arith.constant 0 : i32
    %13 = vector.broadcast %c0_i32_7 : i32 to vector<8x256xi32>
    %14 = arith.cmpi slt, %10, %13 : vector<8x256xi32>
    %c0_i32_8 = arith.constant 0 : i32
    %15 = arith.cmpi slt, %8, %c0_i32_8 : i32
    %16 = vector.broadcast %15 : i1 to vector<8x256xi1>
    %17 = vector.broadcast %16 : vector<8x256xi1> to vector<8x256xi1>
    %18 = arith.xori %14, %17 : vector<8x256xi1>
    %19 = arith.andi %18, %12 : vector<8x256xi1>
    %20 = vector.broadcast %8 : i32 to vector<8x256xi32>
    %21 = arith.addi %10, %20 : vector<8x256xi32>
    %22 = arith.select %19, %21, %10 : vector<8x256xi1>, vector<8x256xi32>
    %c1_i32_9 = arith.constant 1 : i32
    %23 = vector.broadcast %c1_i32_9 : i32 to vector<8x256xi32>
    %24 = arith.cmpi sge, %22, %23 : vector<8x256xi32>
    %c14_i32 = arith.constant 14 : i32
    %25 = vector.broadcast %c14_i32 : i32 to vector<8x256xi32>
    %26 = arith.cmpi sle, %22, %25 : vector<8x256xi32>
    %c0_10 = arith.constant 0 : index
    %c128 = arith.constant 128 : index
    %27 = vector.load %arg7[%c0_10, %c128] : memref<8x512xf32, #tpu.memory_space<vmem>>, vector<8x256xf32>
    tpu.vector_store %arg7[%c0_10, %c128], %1 {strides = array<i32>} : memref<8x512xf32, #tpu.memory_space<vmem>>, vector<8x256xf32>,
    %c0_11 = arith.constant 0 : index
    %c0_12 = arith.constant 0 : index
    %28 = vector.load %arg2[%c0_11, %c0_12] : memref<8x72xf32, #tpu.memory_space<vmem>>, vector<8x72xf32>
    %c0_13 = arith.constant 0 : index
    %c111 = arith.constant 111 : index
    %29 = vector.load %arg7[%c0_13, %c111] : memref<8x512xf32, #tpu.memory_space<vmem>>, vector<8x256xf32>
    %cst_14 = arith.constant 0.000000e+00 : f32
    %30 = vector.broadcast %cst_14 : f32 to vector<8x256xf32>
    %31 = arith.select %24, %29, %30 : vector<8x256xi1>, vector<8x256xf32>
    %c0_15 = arith.constant 0 : index
    %c112 = arith.constant 112 : index
    %32 = vector.load %arg7[%c0_15, %c112] : memref<8x512xf32, #tpu.memory_space<vmem>>, vector<8x256xf32>
    %c0_16 = arith.constant 0 : index
    %c113 = arith.constant 113 : index
    %33 = vector.load %arg7[%c0_16, %c113] : memref<8x512xf32, #tpu.memory_space<vmem>>, vector<8x256xf32>
    %cst_17 = arith.constant 0.000000e+00 : f32
    %34 = vector.broadcast %cst_17 : f32 to vector<8x256xf32>
    %35 = arith.select %26, %33, %34 : vector<8x256xi1>, vector<8x256xf32>
    %c0_18 = arith.constant 0 : index
    %c127 = arith.constant 127 : index
    %36 = vector.load %arg7[%c0_18, %c127] : memref<8x512xf32, #tpu.memory_space<vmem>>, vector<8x256xf32>
    %cst_19 = arith.constant 0.000000e+00 : f32
    %37 = vector.broadcast %cst_19 : f32 to vector<8x256xf32>
    %38 = arith.select %24, %36, %37 : vector<8x256xi1>, vector<8x256xf32>
    %c0_20 = arith.constant 0 : index
    %c128_21 = arith.constant 128 : index
    %39 = vector.load %arg7[%c0_20, %c128_21] : memref<8x512xf32, #tpu.memory_space<vmem>>, vector<8x256xf32>
    %c0_22 = arith.constant 0 : index
    %c129 = arith.constant 129 : index
    %40 = vector.load %arg7[%c0_22, %c129] : memref<8x512xf32, #tpu.memory_space<vmem>>, vector<8x256xf32>
    %cst_23 = arith.constant 0.000000e+00 : f32
    %41 = vector.broadcast %cst_23 : f32 to vector<8x256xf32>
    %42 = arith.select %26, %40, %41 : vector<8x256xi1>, vector<8x256xf32>
    %c0_24 = arith.constant 0 : index
    %c143 = arith.constant 143 : index
    %43 = vector.load %arg7[%c0_24, %c143] : memref<8x512xf32, #tpu.memory_space<vmem>>, vector<8x256xf32>
    %cst_25 = arith.constant 0.000000e+00 : f32
    %44 = vector.broadcast %cst_25 : f32 to vector<8x256xf32>
    %45 = arith.select %24, %43, %44 : vector<8x256xi1>, vector<8x256xf32>
    %c0_26 = arith.constant 0 : index
    %c144 = arith.constant 144 : index
    %46 = vector.load %arg7[%c0_26, %c144] : memref<8x512xf32, #tpu.memory_space<vmem>>, vector<8x256xf32>
    %c0_27 = arith.constant 0 : index
    %c145 = arith.constant 145 : index
    %47 = vector.load %arg7[%c0_27, %c145] : memref<8x512xf32, #tpu.memory_space<vmem>>, vector<8x256xf32>
    %cst_28 = arith.constant 0.000000e+00 : f32
    %48 = vector.broadcast %cst_28 : f32 to vector<8x256xf32>
    %49 = arith.select %26, %47, %48 : vector<8x256xi1>, vector<8x256xf32>
    %50 = tpu.concatenate %31, %32, %35, %38, %39, %42, %45, %46, %49 in 0 : vector<8x256xf32>, vector<8x256xf32>, vector<8x256xf32>, vector<8x256xf32>, vector<8x256xf32>, vector<8x256xf32>, vector<8x256xf32>, vector<8x256xf32>, vector<8x256xf32> -> vector<72x256xf32>
    %cst_29 = arith.constant dense<0.000000e+00> : vector<8x256xf32>
    %51 = tpu.matmul %28, %50, %cst_29 {dimension_numbers = #tpu.dot_dimension_numbers<[1], [0], [0], [1], [0, 0, 1, 1], [], []>} : vector<8x72xf32>, vector<72x256xf32>, vector<8x256xf32> -> vector<8x256xf32>
    %c0_30 = arith.constant 0 : index
    %c0_31 = arith.constant 0 : index
    %52 = vector.load %arg3[%c0_30, %c0_31] : memref<8x1xf32, #tpu.memory_space<vmem>>, vector<8x1xf32>
    %53 = vector.broadcast %52 : vector<8x1xf32> to vector<8x256xf32>
    %54 = arith.addf %51, %53 : vector<8x256xf32>
    %cst_32 = arith.constant 0.000000e+00 : f32
    %55 = vector.broadcast %cst_32 : f32 to vector<8x256xf32>
    %56 = arith.maximumf %54, %55 : vector<8x256xf32>
    %c0_33 = arith.constant 0 : index
    %c128_34 = arith.constant 128 : index
    %57 = vector.load %arg7[%c0_33, %c128_34] : memref<8x512xf32, #tpu.memory_space<vmem>>, vector<8x256xf32>
    tpu.vector_store %arg7[%c0_33, %c128_34], %56 {strides = array<i32>} : memref<8x512xf32, #tpu.memory_space<vmem>>, vector<8x256xf32>,
    %c0_35 = arith.constant 0 : index
    %c0_36 = arith.constant 0 : index
    %58 = vector.load %arg4[%c0_35, %c0_36] : memref<8x72xf32, #tpu.memory_space<vmem>>, vector<8x72xf32>
    %c0_37 = arith.constant 0 : index
    %c111_38 = arith.constant 111 : index
    %59 = vector.load %arg7[%c0_37, %c111_38] : memref<8x512xf32, #tpu.memory_space<vmem>>, vector<8x256xf32>
    %cst_39 = arith.constant 0.000000e+00 : f32
    %60 = vector.broadcast %cst_39 : f32 to vector<8x256xf32>
    %61 = arith.select %24, %59, %60 : vector<8x256xi1>, vector<8x256xf32>
    %c0_40 = arith.constant 0 : index
    %c112_41 = arith.constant 112 : index
    %62 = vector.load %arg7[%c0_40, %c112_41] : memref<8x512xf32, #tpu.memory_space<vmem>>, vector<8x256xf32>
    %c0_42 = arith.constant 0 : index
    %c113_43 = arith.constant 113 : index
    %63 = vector.load %arg7[%c0_42, %c113_43] : memref<8x512xf32, #tpu.memory_space<vmem>>, vector<8x256xf32>
    %cst_44 = arith.constant 0.000000e+00 : f32
    %64 = vector.broadcast %cst_44 : f32 to vector<8x256xf32>
    %65 = arith.select %26, %63, %64 : vector<8x256xi1>, vector<8x256xf32>
    %c0_45 = arith.constant 0 : index
    %c127_46 = arith.constant 127 : index
    %66 = vector.load %arg7[%c0_45, %c127_46] : memref<8x512xf32, #tpu.memory_space<vmem>>, vector<8x256xf32>
    %cst_47 = arith.constant 0.000000e+00 : f32
    %67 = vector.broadcast %cst_47 : f32 to vector<8x256xf32>
    %68 = arith.select %24, %66, %67 : vector<8x256xi1>, vector<8x256xf32>
    %c0_48 = arith.constant 0 : index
    %c128_49 = arith.constant 128 : index
    %69 = vector.load %arg7[%c0_48, %c128_49] : memref<8x512xf32, #tpu.memory_space<vmem>>, vector<8x256xf32>
    %c0_50 = arith.constant 0 : index
    %c129_51 = arith.constant 129 : index
    %70 = vector.load %arg7[%c0_50, %c129_51] : memref<8x512xf32, #tpu.memory_space<vmem>>, vector<8x256xf32>
    %cst_52 = arith.constant 0.000000e+00 : f32
    %71 = vector.broadcast %cst_52 : f32 to vector<8x256xf32>
    %72 = arith.select %26, %70, %71 : vector<8x256xi1>, vector<8x256xf32>
    %c0_53 = arith.constant 0 : index
    %c143_54 = arith.constant 143 : index
    %73 = vector.load %arg7[%c0_53, %c143_54] : memref<8x512xf32, #tpu.memory_space<vmem>>, vector<8x256xf32>
    %cst_55 = arith.constant 0.000000e+00 : f32
    %74 = vector.broadcast %cst_55 : f32 to vector<8x256xf32>
    %75 = arith.select %24, %73, %74 : vector<8x256xi1>, vector<8x256xf32>
    %c0_56 = arith.constant 0 : index
    %c144_57 = arith.constant 144 : index
    %76 = vector.load %arg7[%c0_56, %c144_57] : memref<8x512xf32, #tpu.memory_space<vmem>>, vector<8x256xf32>
    %c0_58 = arith.constant 0 : index
    %c145_59 = arith.constant 145 : index
    %77 = vector.load %arg7[%c0_58, %c145_59] : memref<8x512xf32, #tpu.memory_space<vmem>>, vector<8x256xf32>
    %cst_60 = arith.constant 0.000000e+00 : f32
    %78 = vector.broadcast %cst_60 : f32 to vector<8x256xf32>
    %79 = arith.select %26, %77, %78 : vector<8x256xi1>, vector<8x256xf32>
    %80 = tpu.concatenate %61, %62, %65, %68, %69, %72, %75, %76, %79 in 0 : vector<8x256xf32>, vector<8x256xf32>, vector<8x256xf32>, vector<8x256xf32>, vector<8x256xf32>, vector<8x256xf32>, vector<8x256xf32>, vector<8x256xf32>, vector<8x256xf32> -> vector<72x256xf32>
    %cst_61 = arith.constant dense<0.000000e+00> : vector<8x256xf32>
    %81 = tpu.matmul %58, %80, %cst_61 {dimension_numbers = #tpu.dot_dimension_numbers<[1], [0], [0], [1], [0, 0, 1, 1], [], []>} : vector<8x72xf32>, vector<72x256xf32>, vector<8x256xf32> -> vector<8x256xf32>
    %c0_62 = arith.constant 0 : index
    %c0_63 = arith.constant 0 : index
    %82 = vector.load %arg5[%c0_62, %c0_63] : memref<8x1xf32, #tpu.memory_space<vmem>>, vector<8x1xf32>
    %83 = vector.broadcast %82 : vector<8x1xf32> to vector<8x256xf32>
    %84 = arith.addf %81, %83 : vector<8x256xf32>
    %cst_64 = arith.constant 1.000000e+00 : f32
    %85 = vector.broadcast %cst_64 : f32 to vector<8x256xf32>
    %86 = arith.mulf %84, %85 : vector<8x256xf32>
    %87 = arith.addf %86, %1 : vector<8x256xf32>
    %c0_65 = arith.constant 0 : index
    %c0_66 = arith.constant 0 : index
    %c0_67 = arith.constant 0 : index
    %88 = vector.load %arg6[%c0_65, %c0_66, %c0_67] : memref<1x8x256xf32, #tpu.memory_space<vmem>>, vector<1x8x256xf32>
    %89 = vector.shape_cast %88 : vector<1x8x256xf32> to vector<8x256xf32>
    %90 = vector.shape_cast %87 : vector<8x256xf32> to vector<1x8x256xf32>
    tpu.vector_store %arg6[%c0_65, %c0_66, %c0_67], %90 {strides = array<i32>} : memref<1x8x256xf32, #tpu.memory_space<vmem>>, vector<1x8x256xf32>,
    return
  }
  func.func @transform_0(%arg0: i32) -> (i32, i32, i32) {
    %c0_i32 = arith.constant 0 : i32
    %c0_i32_0 = arith.constant 0 : i32
    %c0_i32_1 = arith.constant 0 : i32
    return %arg0, %c0_i32, %c0_i32_0 : i32, i32, i32
  }
  func.func @transform_1(%arg0: i32) -> (i32, i32) {
    %c0_i32 = arith.constant 0 : i32
    %c0_i32_0 = arith.constant 0 : i32
    %c0_i32_1 = arith.constant 0 : i32
    return %c0_i32, %c0_i32_0 : i32, i32
  }
  func.func @transform_2(%arg0: i32) -> (i32, i32) {
    %c0_i32 = arith.constant 0 : i32
    %c0_i32_0 = arith.constant 0 : i32
    %c0_i32_1 = arith.constant 0 : i32
    return %c0_i32, %c0_i32_0 : i32, i32
  }
  func.func @transform_3(%arg0: i32) -> (i32, i32) {
    %c0_i32 = arith.constant 0 : i32
    %c0_i32_0 = arith.constant 0 : i32
    %c0_i32_1 = arith.constant 0 : i32
    return %c0_i32, %c0_i32_0 : i32, i32
  }
  func.func @transform_4(%arg0: i32) -> (i32, i32) {
    %c0_i32 = arith.constant 0 : i32
    %c0_i32_0 = arith.constant 0 : i32
    %c0_i32_1 = arith.constant 0 : i32
    return %c0_i32, %c0_i32_0 : i32, i32
  }
  func.func @transform_5(%arg0: i32) -> (i32, i32, i32) {
    %c0_i32 = arith.constant 0 : i32
    %c0_i32_0 = arith.constant 0 : i32
    %c0_i32_1 = arith.constant 0 : i32
    return %arg0, %c0_i32, %c0_i32_0 : i32, i32, i32
  }
}

</mosaic_0001>

<bundles_post_ra>
// kernel: resblock_forward.1
= control target key start
LH: loop header
LB: loop body
LE: loop exit
PB: predicated region body
PF: predicated region fallthrough
CT: control target
= control target key end

     0   :  { %s771_s18 = smov 0   ;;  %s991_s0 = inlined_call_operand.vmem [shape: f32[2,8,256], index: 0, kind: input, shape index: {}]   ;;  %s992_s1 = inlined_call_operand.vmem [shape: f32[8,72], index: 1, kind: input, shape index: {}]   ;;  %s993_s2 = inlined_call_operand.vmem [shape: f32[8,1], index: 2, kind: input, shape index: {}]   ;;  %s994_s3 = inlined_call_operand.vmem [shape: f32[8,72], index: 3, kind: input, shape index: {}]   ;;  %s995_s4 = inlined_call_operand.vmem [shape: f32[8,1], index: 4, kind: input, shape index: {}]   ;;  %s996_s5 = inlined_call_operand.vmem [shape: f32[2,8,256], index: 5, kind: output, shape index: {}]  }
   0x1 LB: > { %s642_s19 = sadd.s32 4294967295, %s729_s18   ;;  %p646_p0 = scmp.ge.s32.totalorder %s729_s18, 1  ;;  %s729_s18 = sphi %s771_s18, %s15_s18  }
   0x2   : > { %p187_p1 = scmp.lt.s32.totalorder %s729_s18, 3 }
   0x4   : > { %p188_p2 = pnand %p646_p0, %p187_p1 }
   0x5   : > { %p215_p3 = scmp.lt.s32.totalorder (!%p188_p2), %s642_s19, 1  ;;  %s732_s20 = smov (!%p188_p2), 111  }
   0x6   : > { %191 = sbr.rel (%p188_p2) target bundleno = 598 (0x256), region = 40  ;;  %s733_s21 = smov (!%p188_p2), 112  }
   0x7   : > { %s734_s26 = smov (!%p188_p2), 113   ;;  %s735_s27 = smov (!%p188_p2), 127  }
   0x8   : > { %s736_s28 = smov (!%p188_p2), 1   ;;  %s737_s29 = smov (!%p188_p2), 15  }
   0x9   : > { %s738_s30 = smov (!%p188_p2), 16   ;;  %s739_s6 = smov (!%p188_p2), 17  }
   0xb   : > { %v731_v0 = vmov 0.0   ;;  %s1006_s19 = smov (!%p215_p3, %s642_s19), 1  ;;  %v229_v7 = vlaneseq  ;;  %vm346_vm0 = vcmask 908288   ;;  %vm370_vm3 = vcmask 916480   ;;  %v375_v35 = vld [vmem:[%s993_s2] sm:$0xff] }
   0xc   : > { %344 = vrot.lane.b32.xlu1 %v731_v0, %s732_s20  ;;  %368 = vrot.lane.b32.xlu2 %v731_v0, %s733_s21  ;;  %s681_s22 = sshll.u32 %s1006_s19, 4  ;;  %vm333_vm4 = vcmask 924672   ;;  %vm320_vm7 = vcmask 1039360   ;;  %v740_v38 = vmov 0   ;;  %vm301_vm8 = vcmask 7168   ;;  %v262_v54 = vld [vmem:[%s992_s1] sm:$0xff] }
   0xd   : > { %s219_s25 = scalar_lea.vmem %s991_s0, %s681_s22  ;;  %v230_v9 = vand.u32 127, %v229_v7  ;;  %711 = vset.pattern.permute.xlu1 %v740_v38  ;;  %722 = vset.pattern.permute.xlu0 %v740_v38  ;;  %vm288_vm9 = vcmask 121856   ;;  %vm359_vm10 = vcmask 130048   ;;  %vm275_vm11 = vcmask 138240   ;;  %v429_v18 = vld [vmem:[%s994_s3] sm:$0xff]  ;;  %s224_s17 = scalar_lea.vmem %s996_s5, %s681_s22 }
   0xe   : > { %v791_v1 = vld [vmem:[%s219_s25] sm:$0xff]  ;;  %v793_v2 = vld [vmem:[%s219_s25 + $0x8] sm:$0xff]  ;;  %vm381_vm12 = vcmask 588800  }
   0xf   : > { %340 = vrot.lane.b32.xlu0 %v791_v1, %s732_s20  ;;  %v701_v3 = vpack.i.bf16 %v793_v2, %v791_v1  ;;  %v706_v4 = vpack.i.bf16 %v791_v1, %v731_v0  ;;  %v231_v10 = vadd.s32 128, %v230_v9  ;;  %v236_v14 = vand.u32 15, %v230_v9 }
  0x11   : > { %v243_v15 = vand.u32 15, %v231_v10  ;;  %vm843_vm1 = vcmp.le.s32.totalorder %v236_v14, 14  ;;  %vm859_vm5 = vcmp.ge.s32.totalorder %v236_v14, 1 }
  0x13   : > { %vm847_vm2 = vcmp.le.s32.totalorder %v243_v15, 14  ;;  %vm863_vm6 = vcmp.ge.s32.totalorder %v243_v15, 1 }
  0x14   : > { %702 = vrot.lane.b32.xlu1 %v701_v3, %s733_s21  ;;  %327 = vrot.lane.b32.xlu2 %v791_v1, %s734_s26 }
  0x17   : > { %342 = vrot.lane.b32.xlu0 %v793_v2, %s732_s20 }
  0x1c   : > { %331 = vrot.lane.b32.xlu1 %v731_v0, %s734_s26  ;;  %314 = vrot.lane.b32.xlu2 %v791_v1, %s735_s27 }
  0x1f   : > { %329 = vrot.lane.b32.xlu0 %v793_v2, %s734_s26 }
  0x24   : > { %318 = vrot.lane.b32.xlu1 %v731_v0, %s735_s27  ;;  %295 = vrot.lane.b32.xlu2 %v731_v0, %s736_s28 }
  0x27   : > { %316 = vrot.lane.b32.xlu0 %v793_v2, %s735_s27 }
  0x2c   : > { %299 = vrot.lane.b32.xlu1 %v793_v2, %s736_s28  ;;  %282 = vrot.lane.b32.xlu2 %v731_v0, %s737_s29 }
  0x2f   : > { %297 = vrot.lane.b32.xlu0 %v791_v1, %s736_s28 }
  0x34   : > { %286 = vrot.lane.b32.xlu1 %v793_v2, %s737_s29  ;;  %707 = vrot.lane.b32.xlu2 %v706_v4, %s738_s30 }
  0x37   : > { %284 = vrot.lane.b32.xlu0 %v791_v1, %s737_s29 }
  0x3c   : > { %269 = vrot.lane.b32.xlu1 %v731_v0, %s739_s6  ;;  %271 = vrot.lane.b32.xlu2 %v791_v1, %s739_s6 }
  0x3f   : > { %357 = vrot.lane.b32.xlu0 %v793_v2, %s738_s30 }
  0x44   : > { %378 = vperm.xlu1 %711, %v375_v35  }
  0x47   : > { %273 = vrot.lane.b32.xlu0 %v793_v2, %s739_s6 }
  0x4c   : > { %506 = vrot.lane.b32.xlu1 %v731_v0, %s732_s20 }
  0x4f   : > { %528 = vrot.lane.b32.xlu0 %v731_v0, %s733_s21 }
  0x54   : > { %460 = vrot.lane.b32.xlu1 %v731_v0, %s736_s28 }
  0x57   : > { %494 = vrot.lane.b32.xlu0 %v731_v0, %s734_s26 }
  0x5c   : > { %448 = vrot.lane.b32.xlu1 %v731_v0, %s737_s29 }
  0x5f   : > { %482 = vrot.lane.b32.xlu0 %v731_v0, %s735_s27 }
  0x66   : > { %v369_v5 = vpop.permute.xlu2 %368 }
  0x6e   : > { %v328_v6 = vpop.permute.xlu2 %327 }
  0x76   : > { %v315_v12 = vpop.permute.xlu2 %314 }
  0x7e   : > { %v345_v8 = vpop.permute.xlu1 %344  ;;  %v296_v25 = vpop.permute.xlu2 %295 }
  0x81   : > { %v341_v11 = vpop.permute.xlu0 %340 }
  0x86   : > { %v703_v13 = vpop.permute.xlu1 %702  ;;  %v283_v33 = vpop.permute.xlu2 %282 }
  0x87   : > { %v704_v16 = vunpack.i.l.bf16 %v703_v13  ;;  %v705_v17 = vunpack.i.h.bf16 %v703_v13 }
  0x89   : > { %v343_v20 = vpop.permute.xlu0 %342  ;;  %v371_v23 = vsel %vm370_vm3, %v704_v16, %v705_v17  ;;  %v372_v26 = vsel %vm370_vm3, %v705_v17, %v369_v5 }
  0x8a   : > { %v347_v21 = vsel %vm346_vm0, %v341_v11, %v343_v20  ;;  %v348_v22 = vsel %vm346_vm0, %v343_v20, %v345_v8 }
  0x8b   : > { %651 = vmatpush.msk.msra.mxu0 %vm843_vm1, %v347_v21  ;;  %658 = vmatpush.msk.msra.mxu1 %vm847_vm2, %v348_v22 }
  0x8d   : > { %413 = vmatpush.msra.mxu1 %v372_v26  ;;  %393 = vmatpush.msra.mxu0 %v371_v23 }
  0x8e   : > { %v332_v24 = vpop.permute.xlu1 %331  ;;  %v708_v40 = vpop.permute.xlu2 %707 }
  0x8f   : > { %v710_v45 = vunpack.i.h.bf16 %v708_v40  ;;  %v709_v46 = vunpack.i.l.bf16 %v708_v40 }
  0x91   : > { %v330_v29 = vpop.permute.xlu0 %329  ;;  %v360_v51 = vsel %vm359_vm10, %v709_v46, %v710_v45 }
  0x92   : > { %v334_v30 = vsel %vm333_vm4, %v328_v6, %v330_v29  ;;  %v335_v31 = vsel %vm333_vm4, %v330_v29, %v332_v24 }
  0x93   : > { %652 = vmatpush.msk.msra.mxu0 %vm859_vm5, %v334_v30  ;;  %659 = vmatpush.msk.msra.mxu1 %vm863_vm6, %v335_v31 }
  0x96   : > { %v319_v32 = vpop.permute.xlu1 %318  ;;  %v272_v48 = vpop.permute.xlu2 %271 }
  0x99   : > { %v317_v34 = vpop.permute.xlu0 %316 }
  0x9a   : > { %v321_v36 = vsel %vm320_vm7, %v315_v12, %v317_v34  ;;  %v322_v37 = vsel %vm320_vm7, %v317_v34, %v319_v32 }
  0x9b   : > { %653 = vmatpush.msk.msra.mxu0 %vm843_vm1, %v321_v36  ;;  %660 = vmatpush.msk.msra.mxu1 %vm847_vm2, %v322_v37 }
  0x9d   : > { %396 = vmatpush.msra.mxu0 %v791_v1  ;;  %416 = vmatpush.msra.mxu1 %v793_v2 }
  0x9e   : > { %v300_v39 = vpop.permute.xlu1 %299 }
  0xa1   : > { %v298_v41 = vpop.permute.xlu0 %297 }
  0xa2   : > { %v302_v42 = vsel %vm301_vm8, %v296_v25, %v298_v41  ;;  %v303_v43 = vsel %vm301_vm8, %v298_v41, %v300_v39 }
  0xa3   : > { %654 = vmatpush.msk.msra.mxu0 %vm859_vm5, %v302_v42  ;;  %661 = vmatpush.msk.msra.mxu1 %vm863_vm6, %v303_v43 }
  0xa6   : > { %v287_v44 = vpop.permute.xlu1 %286 }
  0xa9   : > { %v285_v47 = vpop.permute.xlu0 %284 }
  0xaa   : > { %v289_v49 = vsel %vm288_vm9, %v283_v33, %v285_v47  ;;  %v290_v50 = vsel %vm288_vm9, %v285_v47, %v287_v44 }
  0xab   : > { %655 = vmatpush.msk.msra.mxu0 %vm843_vm1, %v289_v49  ;;  %662 = vmatpush.msk.msra.mxu1 %vm847_vm2, %v290_v50 }
  0xad   : > { %399 = vmatpush.msra.mxu0 %v360_v51 }
  0xae   : > { %v270_v52 = vpop.permute.xlu1 %269 }
  0xaf   : > { %v276_v53 = vsel %vm275_vm11, %v270_v52, %v272_v48 }
  0xb0   : > { %656 = vmatpush.msk.msra.mxu0 %vm859_vm5, %v276_v53 }
  0xb1   : > { %657 = vmatmul.msk.f32.vlgmr.msra.gmra.mxu0 %vm381_vm12, %v262_v54  ;;  %v358_v55 = vpop.permute.xlu0 %357 }
  0xb2   : > { %v361_v56 = vsel %vm359_vm10, %v710_v45, %v358_v55 }
  0xb3   : > { %419 = vmatpush.msra.mxu1 %v361_v56 }
  0xb6   : > { %v379_v59 = vpop.permute.xlu1 %378 }
  0xb9   : > { %v274_v57 = vpop.permute.xlu0 %273 }
  0xba   : > { %v277_v58 = vsel %vm275_vm11, %v272_v48, %v274_v57 }
  0xbb   : > { %663 = vmatpush.msk.msra.mxu1 %vm863_vm6, %v277_v58 }
  0xbc   : > { %664 = vmatmul.msk.f32.vlgmr.msra.gmra.mxu1 %vm381_vm12, %v262_v54 }
  0xbe   : > { %v507_v7 = vpop.permute.xlu1 %506 }
  0xc1   : > { %v529_v10 = vpop.permute.xlu0 %528 }
  0xc6   : > { %v461_v9 = vpop.permute.xlu1 %460 }
  0xc9   : > { %v495_v13 = vpop.permute.xlu0 %494 }
  0xce   : > { %v449_v12 = vpop.permute.xlu1 %448 }
  0xd1   : > { %v483_v16 = vpop.permute.xlu0 %482 }
 0x12e   : > { %v402_v60 = vpop.f32.mrf.mxu0 }
 0x12f   : > { %v403_v61 = vadd.f32 %v402_v60, %v379_v59 }
 0x131   : > { %v425_v62 = vmax.f32 %v403_v61, 0.0 }
 0x133   : > { %490 = vrot.lane.b32.xlu1 %v425_v62, %s734_s26  ;;  %502 = vrot.lane.b32.xlu2 %v425_v62, %s732_s20  ;;  %v717_v6 = vpack.i.bf16 %v425_v62, %v731_v0 }
 0x139   : > { %v422_v63 = vpop.f32.mrf.mxu1 }
 0x13a   : > { %v423_v3 = vadd.f32 %v422_v63, %v379_v59 }
 0x13b   : > { %478 = vrot.lane.b32.xlu1 %v425_v62, %s735_s27 }
 0x13c   : > { %v426_v4 = vmax.f32 %v423_v3, 0.0 }
 0x13e   : > { %504 = vrot.lane.b32.xlu0 %v426_v4, %s732_s20  ;;  %v712_v5 = vpack.i.bf16 %v426_v4, %v425_v62 }
 0x140   : > { %713 = vrot.lane.b32.xlu2 %v712_v5, %s733_s21 }
 0x143   : > { %718 = vrot.lane.b32.xlu1 %v717_v6, %s738_s30 }
 0x146   : > { %464 = vrot.lane.b32.xlu0 %v426_v4, %s736_s28 }
 0x148   : > { %492 = vrot.lane.b32.xlu2 %v426_v4, %s734_s26 }
 0x14b   : > { %438 = vrot.lane.b32.xlu1 %v425_v62, %s739_s6 }
 0x14e   : > { %452 = vrot.lane.b32.xlu0 %v426_v4, %s737_s29 }
 0x150   : > { %480 = vrot.lane.b32.xlu2 %v426_v4, %s735_s27 }
 0x156   : > { %436 = vrot.lane.b32.xlu0 %v731_v0, %s739_s6  ;;  %v534_v0 = vld [vmem:[%s995_s4] sm:$0xff] }
 0x158   : > { %462 = vrot.lane.b32.xlu2 %v425_v62, %s736_s28 }
 0x15e   : > { %537 = vperm.xlu0 %722, %v534_v0  }
 0x160   : > { %450 = vrot.lane.b32.xlu2 %v425_v62, %s737_s29 }
 0x168   : > { %518 = vrot.lane.b32.xlu2 %v426_v4, %s738_s30 }
 0x170   : > { %440 = vrot.lane.b32.xlu2 %v426_v4, %s739_s6 }
 0x18d   : > { %v503_v8 = vpop.permute.xlu2 %502 }
 0x19a   : > { %v714_v11 = vpop.permute.xlu2 %713 }
 0x19b   : > { %v716_v21 = vunpack.i.h.bf16 %v714_v11  ;;  %v715_v22 = vunpack.i.l.bf16 %v714_v11 }
 0x19d   : > { %v530_v29 = vsel %vm370_vm3, %v715_v22, %v716_v21  ;;  %v531_v30 = vsel %vm370_vm3, %v716_v21, %v529_v10 }
 0x1a2   : > { %v493_v14 = vpop.permute.xlu2 %492 }
 0x1a3   : > { %v497_v32 = vsel %vm333_vm4, %v493_v14, %v495_v13 }
 0x1a5   : > { %v491_v15 = vpop.permute.xlu1 %490 }
 0x1a6   : > { %v496_v31 = vsel %vm333_vm4, %v491_v15, %v493_v14 }
 0x1aa   : > { %v481_v17 = vpop.permute.xlu2 %480 }
 0x1ab   : > { %v485_v34 = vsel %vm320_vm7, %v481_v17, %v483_v16 }
 0x1ad   : > { %v479_v20 = vpop.permute.xlu1 %478 }
 0x1ae   : > { %v484_v33 = vsel %vm320_vm7, %v479_v20, %v481_v17 }
 0x1b0   : > { %v505_v23 = vpop.permute.xlu0 %504 }
 0x1b1   : > { %v508_v24 = vsel %vm346_vm0, %v503_v8, %v505_v23  ;;  %v509_v25 = vsel %vm346_vm0, %v505_v23, %v507_v7 }
 0x1b2   : > { %v463_v26 = vpop.permute.xlu2 %462  ;;  %665 = vmatpush.msk.msra.mxu2 %vm843_vm1, %v508_v24  ;;  %672 = vmatpush.msk.msra.mxu3 %vm847_vm2, %v509_v25 }
 0x1b3   : > { %v466_v40 = vsel %vm301_vm8, %v461_v9, %v463_v26 }
 0x1b4   : > { %551 = vmatpush.msra.mxu2 %v530_v29  ;;  %571 = vmatpush.msra.mxu3 %v531_v30 }
 0x1b5   : > { %v719_v35 = vpop.permute.xlu1 %718 }
 0x1b6   : > { %666 = vmatpush.msk.msra.mxu2 %vm859_vm5, %v496_v31  ;;  %673 = vmatpush.msk.msra.mxu3 %vm863_vm6, %v497_v32  ;;  %v721_v38 = vunpack.i.h.bf16 %v719_v35  ;;  %v720_v39 = vunpack.i.l.bf16 %v719_v35 }
 0x1b8   : > { %667 = vmatpush.msk.msra.mxu2 %vm843_vm1, %v484_v33  ;;  %674 = vmatpush.msk.msra.mxu3 %vm847_vm2, %v485_v34  ;;  %v465_v36 = vpop.permute.xlu0 %464  ;;  %v520_v43 = vsel %vm359_vm10, %v720_v39, %v721_v38 }
 0x1b9   : > { %v467_v41 = vsel %vm301_vm8, %v463_v26, %v465_v36 }
 0x1ba   : > { %v451_v37 = vpop.permute.xlu2 %450  ;;  %554 = vmatpush.msra.mxu2 %v425_v62  ;;  %574 = vmatpush.msra.mxu3 %v426_v4 }
 0x1bb   : > { %v454_v42 = vsel %vm288_vm9, %v449_v12, %v451_v37 }
 0x1bc   : > { %668 = vmatpush.msk.msra.mxu2 %vm859_vm5, %v466_v40  ;;  %675 = vmatpush.msk.msra.mxu3 %vm863_vm6, %v467_v41 }
 0x1bd   : > { %v439_v48 = vpop.permute.xlu1 %438 }
 0x1be   : > { %669 = vmatpush.msk.msra.mxu2 %vm843_vm1, %v454_v42 }
 0x1c0   : > { %557 = vmatpush.msra.mxu2 %v520_v43  ;;  %v453_v44 = vpop.permute.xlu0 %452 }
 0x1c1   : > { %v455_v45 = vsel %vm288_vm9, %v451_v37, %v453_v44 }
 0x1c2   : > { %v519_v46 = vpop.permute.xlu2 %518  ;;  %676 = vmatpush.msk.msra.mxu3 %vm847_vm2, %v455_v45 }
 0x1c3   : > { %v521_v47 = vsel %vm359_vm10, %v721_v38, %v519_v46 }
 0x1c4   : > { %577 = vmatpush.msra.mxu3 %v521_v47 }
 0x1c8   : > { %v437_v49 = vpop.permute.xlu0 %436 }
 0x1c9   : > { %v442_v50 = vsel %vm275_vm11, %v437_v49, %v439_v48 }
 0x1ca   : > { %v441_v51 = vpop.permute.xlu2 %440  ;;  %670 = vmatpush.msk.msra.mxu2 %vm859_vm5, %v442_v50 }
 0x1cb   : > { %v443_v52 = vsel %vm275_vm11, %v439_v48, %v441_v51  ;;  %671 = vmatmul.msk.f32.vlgmr.msra.gmra.mxu2 %vm381_vm12, %v429_v18 }
 0x1cc   : > { %677 = vmatpush.msk.msra.mxu3 %vm863_vm6, %v443_v52 }
 0x1cd   : > { %678 = vmatmul.msk.f32.vlgmr.msra.gmra.mxu3 %vm381_vm12, %v429_v18 }
 0x1d0   : > { %v538_v19 = vpop.permute.xlu0 %537 }
 0x24e   : > { %v560_v53 = vpop.f32.mrf.mxu2 }
 0x24f   : > { %v561_v54 = vadd.f32 %v560_v53, %v538_v19 }
 0x250   : > { %v580_v55 = vpop.f32.mrf.mxu3 }
 0x251   : > { %v581_v27 = vadd.f32 %v580_v55, %v538_v19  ;;  %v583_v56 = vadd.f32 %v561_v54, %v791_v1 }
 0x253   : > { %v584_v57 = vadd.f32 %v581_v27, %v793_v2  ;;  %585 = vst [vmem:[%s224_s17] sm:$0xff] %v583_v56 }
 0x255   : > { %586 = vst [vmem:[%s224_s17 + $0x8] sm:$0xff] %v584_v57 }
 0x256 PF: > { %s15_s18 = sadd.s32 1, %s729_s18  }
 0x257   : > { %p12_p4 = scmp.ge.s32.totalorder %s15_s18, 4  }
 0x259   :  { %14 = sbr.rel (!%p12_p4) target bundleno = 1 (0x1), region = 70 }

</bundles_post_ra>
